<compile_context>
chip_gen: v7x
topology: tpu7x:2x2x1
jax: 0.10.0
libtpu: 0.0.40
codegen_flags: <defaults>
</compile_context>

<pallas_src>
import functools

import jax
import jax.numpy as jnp
from jax.experimental import pallas as pl
from jax.experimental.pallas import tpu as pltpu

HIDDEN = 200
DROP_P = 0.4


def mlp_kernel(seed_ref, x_ref,
               w1_ref, b1_ref, w2_ref, b2_ref,
               w3_ref, b3_ref, w4_ref, b4_ref,
               o_ref, *, training):
    """Fused MLP forward on one (TB, *) batch tile.

    Weights arrive pre-transposed as (in_pad, out_pad); biases as (1, out_pad).
    Dropout is identity in eval mode (training=False); in training mode it uses the
    on-chip PRNG (deterministic given seed, per-tile stream via program_id).
    """
    if training:
        pltpu.prng_seed(seed_ref[0] + pl.program_id(0))

    def layer(h, w_ref, b_ref):
        y = jnp.dot(h, w_ref[...], preferred_element_type=jnp.float32)
        y = jnp.maximum(y + b_ref[...], 0.0)          # bias + ReLU (f32 VPU)
        if training:
            # Dropout(p): keep with prob 1-p, scale survivors by 1/(1-p).
            bits = pltpu.prng_random_bits(y.shape)
            if bits.dtype != jnp.uint32:
                bits = pltpu.bitcast(bits, jnp.uint32)
            thresh = jnp.uint32(int(DROP_P * (2 ** 32)))
            keep = bits >= thresh
            y = jnp.where(keep, y * (1.0 / (1.0 - DROP_P)), 0.0)
        return y

    h = x_ref[...].astype(jnp.float32)
    h = layer(h, w1_ref, b1_ref)
    h = layer(h, w2_ref, b2_ref)
    h = layer(h, w3_ref, b3_ref)
    h = layer(h, w4_ref, b4_ref)
    o_ref[...] = h.astype(o_ref.dtype)


def _round_up(n, m):
    return ((n + m - 1) // m) * m


def _const_spec(shape):
    """Full-array block whose index_map is constant -> stays VMEM-resident across grid."""
    nd = len(shape)
    return pl.BlockSpec(shape, lambda i, _nd=nd: (0,) * _nd)


def my_mlp(x, params, *, seed=0, training=False):
    """x: (B, in_features) float32. params: 4 tuples of (W:(out,in), b:(out,)) (PyTorch layout)."""
    (w1, b1), (w2, b2), (w3, b3), (w4, b4) = params
    B, K = x.shape
    out_features = w4.shape[0]

    # Lane-dense padded dims.
    K_pad = _round_up(K, 128)
    H_pad = _round_up(HIDDEN, 128)          # 200 -> 256
    O_pad = _round_up(out_features, 128)

    # Batch tile: multiple of 8 sublanes, capped at 128 rows per step.
    TB = min(128, _round_up(B, 8))
    B_pad = _round_up(B, TB)

    def prep(w, b, in_pad, out_pad):
        # Transpose once wrapper-side to (in, out) and zero-pad to lane-dense shapes.
        wt = jnp.pad(w.T.astype(jnp.float32),
                     ((0, in_pad - w.shape[1]), (0, out_pad - w.shape[0])))
        bp = jnp.pad(b.astype(jnp.float32), (0, out_pad - b.shape[0])).reshape(1, -1)
        return wt, bp

    w1p, b1p = prep(w1, b1, K_pad, H_pad)
    w2p, b2p = prep(w2, b2, H_pad, H_pad)
    w3p, b3p = prep(w3, b3, H_pad, H_pad)
    w4p, b4p = prep(w4, b4, H_pad, O_pad)

    x_pad = jnp.pad(x.astype(jnp.float32), ((0, B_pad - B), (0, K_pad - K)))
    seed_arr = jnp.array([seed], dtype=jnp.int32)

    kernel = functools.partial(mlp_kernel, training=training)
    out = pl.pallas_call(
        kernel,
        out_shape=jax.ShapeDtypeStruct((B_pad, O_pad), x.dtype),
        grid=(B_pad // TB,),
        in_specs=[pl.BlockSpec(memory_space=pltpu.SMEM),              # seed scalar
                  pl.BlockSpec((TB, K_pad), lambda i: (i, 0)),        # x batch tile
                  _const_spec(w1p.shape), _const_spec(b1p.shape),
                  _const_spec(w2p.shape), _const_spec(b2p.shape),
                  _const_spec(w3p.shape), _const_spec(b3p.shape),
                  _const_spec(w4p.shape), _const_spec(b4p.shape)],
        out_specs=pl.BlockSpec((TB, O_pad), lambda i: (i, 0)),
        compiler_params=pltpu.CompilerParams(dimension_semantics=("parallel",)),
    )(seed_arr, x_pad, w1p, b1p, w2p, b2p, w3p, b3p, w4p, b4p)

    # Slice back to the true (B, out_features) shape.
    return out[:B, :out_features]


def init_params(key, in_features, out_features):
    """Deterministic init mimicking nn.Linear defaults (uniform +/- 1/sqrt(fan_in))."""
    dims = [(in_features, HIDDEN), (HIDDEN, HIDDEN), (HIDDEN, HIDDEN), (HIDDEN, out_features)]
    params = []
    for (fin, fout) in dims:
        key, kw, kb = jax.random.split(key, 3)
        bound = 1.0 / (fin ** 0.5)
        w = jax.random.uniform(kw, (fout, fin), jnp.float32, -bound, bound)
        b = jax.random.uniform(kb, (fout,), jnp.float32, -bound, bound)
        params.append((w, b))
    return params


def ref_mlp(x, params):
    h = x
    for (w, b) in params:
        h = jnp.maximum(h @ w.T + b, 0.0)   # dropout is identity in eval mode
    return h


if __name__ == "__main__":
    key = jax.random.PRNGKey(0)
    kx, kp = jax.random.split(key)

    B, IN_FEATURES, OUT_FEATURES = 8, 32, 4
    x = jax.random.normal(kx, (B, IN_FEATURES), dtype=jnp.float32)
    params = init_params(kp, IN_FEATURES, OUT_FEATURES)

    # Forward pass in eval mode (dropout = identity), matching model.eval() semantics.
    # TODO(synk): training-mode dropout uses the TPU PRNG, so its mask differs from torch's RNG stream.
    out = my_mlp(x, params, training=False)
    out = jax.block_until_ready(out)

    ref = ref_mlp(x, params)
    assert out.shape == (B, OUT_FEATURES)
    assert jnp.allclose(out, ref, atol=1e-4, rtol=1e-4)
    print("KERNEL_OK")
</pallas_src>

<mosaic_0001>
module attributes {stable_mosaic.version = 11 : i64} {
  func.func @mlp_kernel(%arg0: i32, %arg1: memref<1xi32, #tpu.memory_space<smem>>, %arg2: memref<8x128xf32, #tpu.memory_space<vmem>>, %arg3: memref<128x256xf32, #tpu.memory_space<vmem>>, %arg4: memref<1x256xf32, #tpu.memory_space<vmem>>, %arg5: memref<256x256xf32, #tpu.memory_space<vmem>>, %arg6: memref<1x256xf32, #tpu.memory_space<vmem>>, %arg7: memref<256x256xf32, #tpu.memory_space<vmem>>, %arg8: memref<1x256xf32, #tpu.memory_space<vmem>>, %arg9: memref<256x128xf32, #tpu.memory_space<vmem>>, %arg10: memref<1x128xf32, #tpu.memory_space<vmem>>, %arg11: memref<8x128xf32, #tpu.memory_space<vmem>>) attributes {dimension_semantics = [#tpu.dimension_semantics<parallel>], iteration_bounds = array<i64: 1>, scalar_prefetch = 0 : i64, scratch_operands = 0 : i64, tpu.core_type = #tpu.core_type<tc>, window_params = [{transform_indices = @transform_0, window_bounds = array<i64: 1>}, {transform_indices = @transform_1, window_bounds = array<i64: 8, 128>}, {pipeline_mode = #tpu.pipeline_mode<synchronous>, transform_indices = @transform_2, window_bounds = array<i64: 128, 256>}, {pipeline_mode = #tpu.pipeline_mode<synchronous>, transform_indices = @transform_3, window_bounds = array<i64: 1, 256>}, {pipeline_mode = #tpu.pipeline_mode<synchronous>, transform_indices = @transform_4, window_bounds = array<i64: 256, 256>}, {pipeline_mode = #tpu.pipeline_mode<synchronous>, transform_indices = @transform_5, window_bounds = array<i64: 1, 256>}, {pipeline_mode = #tpu.pipeline_mode<synchronous>, transform_indices = @transform_6, window_bounds = array<i64: 256, 256>}, {pipeline_mode = #tpu.pipeline_mode<synchronous>, transform_indices = @transform_7, window_bounds = array<i64: 1, 256>}, {pipeline_mode = #tpu.pipeline_mode<synchronous>, transform_indices = @transform_8, window_bounds = array<i64: 256, 128>}, {pipeline_mode = #tpu.pipeline_mode<synchronous>, transform_indices = @transform_9, window_bounds = array<i64: 1, 128>}, {transform_indices = @transform_10, window_bounds = array<i64: 8, 128>}]} {
    %c0 = arith.constant 0 : index
    %c0_0 = arith.constant 0 : index
    %0 = vector.load %arg2[%c0, %c0_0] : memref<8x128xf32, #tpu.memory_space<vmem>>, vector<8x128xf32>
    %c0_1 = arith.constant 0 : index
    %c0_2 = arith.constant 0 : index
    %1 = vector.load %arg3[%c0_1, %c0_2] : memref<128x256xf32, #tpu.memory_space<vmem>>, vector<128x256xf32>
    %cst = arith.constant dense<0.000000e+00> : vector<8x256xf32>
    %2 = tpu.matmul %0, %1, %cst {dimension_numbers = #tpu.dot_dimension_numbers<[1], [0], [0], [1], [0, 0, 1, 1], [], []>} : vector<8x128xf32>, vector<128x256xf32>, vector<8x256xf32> -> vector<8x256xf32>
    %c0_3 = arith.constant 0 : index
    %c0_4 = arith.constant 0 : index
    %3 = vector.load %arg4[%c0_3, %c0_4] : memref<1x256xf32, #tpu.memory_space<vmem>>, vector<1x256xf32>
    %4 = vector.broadcast %3 : vector<1x256xf32> to vector<8x256xf32>
    %5 = arith.addf %2, %4 : vector<8x256xf32>
    %cst_5 = arith.constant 0.000000e+00 : f32
    %6 = vector.broadcast %cst_5 : f32 to vector<8x256xf32>
    %7 = arith.maximumf %5, %6 : vector<8x256xf32>
    %c0_6 = arith.constant 0 : index
    %c0_7 = arith.constant 0 : index
    %8 = vector.load %arg5[%c0_6, %c0_7] : memref<256x256xf32, #tpu.memory_space<vmem>>, vector<256x256xf32>
    %cst_8 = arith.constant dense<0.000000e+00> : vector<8x256xf32>
    %9 = tpu.matmul %7, %8, %cst_8 {dimension_numbers = #tpu.dot_dimension_numbers<[1], [0], [0], [1], [0, 0, 1, 1], [], []>} : vector<8x256xf32>, vector<256x256xf32>, vector<8x256xf32> -> vector<8x256xf32>
    %c0_9 = arith.constant 0 : index
    %c0_10 = arith.constant 0 : index
    %10 = vector.load %arg6[%c0_9, %c0_10] : memref<1x256xf32, #tpu.memory_space<vmem>>, vector<1x256xf32>
    %11 = vector.broadcast %10 : vector<1x256xf32> to vector<8x256xf32>
    %12 = arith.addf %9, %11 : vector<8x256xf32>
    %cst_11 = arith.constant 0.000000e+00 : f32
    %13 = vector.broadcast %cst_11 : f32 to vector<8x256xf32>
    %14 = arith.maximumf %12, %13 : vector<8x256xf32>
    %c0_12 = arith.constant 0 : index
    %c0_13 = arith.constant 0 : index
    %15 = vector.load %arg7[%c0_12, %c0_13] : memref<256x256xf32, #tpu.memory_space<vmem>>, vector<256x256xf32>
    %cst_14 = arith.constant dense<0.000000e+00> : vector<8x256xf32>
    %16 = tpu.matmul %14, %15, %cst_14 {dimension_numbers = #tpu.dot_dimension_numbers<[1], [0], [0], [1], [0, 0, 1, 1], [], []>} : vector<8x256xf32>, vector<256x256xf32>, vector<8x256xf32> -> vector<8x256xf32>
    %c0_15 = arith.constant 0 : index
    %c0_16 = arith.constant 0 : index
    %17 = vector.load %arg8[%c0_15, %c0_16] : memref<1x256xf32, #tpu.memory_space<vmem>>, vector<1x256xf32>
    %18 = vector.broadcast %17 : vector<1x256xf32> to vector<8x256xf32>
    %19 = arith.addf %16, %18 : vector<8x256xf32>
    %cst_17 = arith.constant 0.000000e+00 : f32
    %20 = vector.broadcast %cst_17 : f32 to vector<8x256xf32>
    %21 = arith.maximumf %19, %20 : vector<8x256xf32>
    %c0_18 = arith.constant 0 : index
    %c0_19 = arith.constant 0 : index
    %22 = vector.load %arg9[%c0_18, %c0_19] : memref<256x128xf32, #tpu.memory_space<vmem>>, vector<256x128xf32>
    %cst_20 = arith.constant dense<0.000000e+00> : vector<8x128xf32>
    %23 = tpu.matmul %21, %22, %cst_20 {dimension_numbers = #tpu.dot_dimension_numbers<[1], [0], [0], [1], [0, 0, 1, 1], [], []>} : vector<8x256xf32>, vector<256x128xf32>, vector<8x128xf32> -> vector<8x128xf32>
    %c0_21 = arith.constant 0 : index
    %c0_22 = arith.constant 0 : index
    %24 = vector.load %arg10[%c0_21, %c0_22] : memref<1x128xf32, #tpu.memory_space<vmem>>, vector<1x128xf32>
    %25 = vector.broadcast %24 : vector<1x128xf32> to vector<8x128xf32>
    %26 = arith.addf %23, %25 : vector<8x128xf32>
    %cst_23 = arith.constant 0.000000e+00 : f32
    %27 = vector.broadcast %cst_23 : f32 to vector<8x128xf32>
    %28 = arith.maximumf %26, %27 : vector<8x128xf32>
    %c0_24 = arith.constant 0 : index
    %c0_25 = arith.constant 0 : index
    %29 = vector.load %arg11[%c0_24, %c0_25] : memref<8x128xf32, #tpu.memory_space<vmem>>, vector<8x128xf32>
    tpu.vector_store %arg11[%c0_24, %c0_25], %28 {strides = array<i32>} : memref<8x128xf32, #tpu.memory_space<vmem>>, vector<8x128xf32>,
    return
  }
  func.func @transform_0(%arg0: i32) -> i32 {
    %c0_i32 = arith.constant 0 : i32
    %c0_i32_0 = arith.constant 0 : i32
    return %c0_i32 : i32
  }
  func.func @transform_1(%arg0: i32) -> (i32, i32) {
    %c0_i32 = arith.constant 0 : i32
    %c0_i32_0 = arith.constant 0 : i32
    return %arg0, %c0_i32 : i32, i32
  }
  func.func @transform_2(%arg0: i32) -> (i32, i32) {
    %c0_i32 = arith.constant 0 : i32
    %c0_i32_0 = arith.constant 0 : i32
    %c0_i32_1 = arith.constant 0 : i32
    return %c0_i32, %c0_i32_0 : i32, i32
  }
  func.func @transform_3(%arg0: i32) -> (i32, i32) {
    %c0_i32 = arith.constant 0 : i32
    %c0_i32_0 = arith.constant 0 : i32
    %c0_i32_1 = arith.constant 0 : i32
    return %c0_i32, %c0_i32_0 : i32, i32
  }
  func.func @transform_4(%arg0: i32) -> (i32, i32) {
    %c0_i32 = arith.constant 0 : i32
    %c0_i32_0 = arith.constant 0 : i32
    %c0_i32_1 = arith.constant 0 : i32
    return %c0_i32, %c0_i32_0 : i32, i32
  }
  func.func @transform_5(%arg0: i32) -> (i32, i32) {
    %c0_i32 = arith.constant 0 : i32
    %c0_i32_0 = arith.constant 0 : i32
    %c0_i32_1 = arith.constant 0 : i32
    return %c0_i32, %c0_i32_0 : i32, i32
  }
  func.func @transform_6(%arg0: i32) -> (i32, i32) {
    %c0_i32 = arith.constant 0 : i32
    %c0_i32_0 = arith.constant 0 : i32
    %c0_i32_1 = arith.constant 0 : i32
    return %c0_i32, %c0_i32_0 : i32, i32
  }
  func.func @transform_7(%arg0: i32) -> (i32, i32) {
    %c0_i32 = arith.constant 0 : i32
    %c0_i32_0 = arith.constant 0 : i32
    %c0_i32_1 = arith.constant 0 : i32
    return %c0_i32, %c0_i32_0 : i32, i32
  }
  func.func @transform_8(%arg0: i32) -> (i32, i32) {
    %c0_i32 = arith.constant 0 : i32
    %c0_i32_0 = arith.constant 0 : i32
    %c0_i32_1 = arith.constant 0 : i32
    return %c0_i32, %c0_i32_0 : i32, i32
  }
  func.func @transform_9(%arg0: i32) -> (i32, i32) {
    %c0_i32 = arith.constant 0 : i32
    %c0_i32_0 = arith.constant 0 : i32
    %c0_i32_1 = arith.constant 0 : i32
    return %c0_i32, %c0_i32_0 : i32, i32
  }
  func.func @transform_10(%arg0: i32) -> (i32, i32) {
    %c0_i32 = arith.constant 0 : i32
    %c0_i32_0 = arith.constant 0 : i32
    return %arg0, %c0_i32 : i32, i32
  }
}

</mosaic_0001>

<bundles_post_ra>
// kernel: tpu_custom_call.1
= control target key start
LH: loop header
LB: loop body
LE: loop exit
PB: predicated region body
PF: predicated region fallthrough
CT: control target
= control target key end

     0   :  { %16 = vsyncpa [#allocation4], 0  ;;  %s1195_s0 = inlined_call_operand.<no memory space> [shape: s32[1], index: 0, kind: input, shape index: {}]   ;;  %s1196_s1 = inlined_call_operand.hbm [shape: f32[8,128], index: 1, kind: input, shape index: {}]   ;;  %s1197_s2 = inlined_call_operand.hbm [shape: f32[128,256], index: 2, kind: input, shape index: {}]   ;;  %s1198_s3 = inlined_call_operand.vmem [shape: f32[1,256], index: 3, kind: input, shape index: {}]   ;;  %s1199_s4 = inlined_call_operand.hbm [shape: f32[256,256], index: 4, kind: input, shape index: {}]   ;;  %s1200_s5 = inlined_call_operand.vmem [shape: f32[1,256], index: 5, kind: input, shape index: {}]   ;;  %s1201_s6 = inlined_call_operand.hbm [shape: f32[256,256], index: 6, kind: input, shape index: {}]   ;;  %s1202_s7 = inlined_call_operand.vmem [shape: f32[1,256], index: 7, kind: input, shape index: {}]   ;;  %s1203_s8 = inlined_call_operand.hbm [shape: f32[256,128], index: 8, kind: input, shape index: {}]   ;;  %s1204_s9 = inlined_call_operand.vmem [shape: f32[1,128], index: 9, kind: input, shape index: {}]   ;;  %s1205_s10 = inlined_call_operand.hbm [shape: f32[8,128], index: 10, kind: output, shape index: {}]  }
   0x1   :  { %17 = vsyncpa [#allocation7], 0 }
   0x2   :  { %18 = vsyncpa [#allocation10], 0 }
   0x3   :  { %19 = vsyncpa [#allocation5], 0  ;;  %s1026_s12 = smov [#allocation6]   ;;  %s886_s16 = scalar_lea.hbm %s1197_s2, 4096 }
   0x4   :  { %s37_s13 = sshll.u32 %s1026_s12, 4  ;;  %p887_p0 = scmp.ne.s32.totalorder %s1197_s2, %s886_s16  ;;  %s38_s13 = int_to_ptr.vmem [resolvable:$true] %s37_s13 }
   0x5   :  { %p890_p1 = scmp.lt.u32.totalorder %s886_s16, %s1197_s2 }
   0x7   :  { %p892_p2 = pnand %p890_p1, %p887_p0 }
   0x9   :  { %895 = shalt.err (!%p892_p2)
}
   0xa   :  { %s896_s21 = scalar_lea.vmem %s38_s13, 4096  ;;  %p901_p4 = scmp.lt.s32.totalorder %s38_s13, %s38_s13 }
   0xb   :  { %p897_p3 = scmp.ne.s32.totalorder %s38_s13, %s896_s21  ;;  %p902_p5 = scmp.lt.s32.totalorder %s896_s21, %s896_s21 }
   0xd   :  { %p903_p6 = por %p902_p5, %p901_p4 }
   0xf   :  { %p904_p7 = pnand %p903_p6, %p897_p3 }
  0x11   :  { %907 = shalt.err (!%p904_p7)
}
  0x12   :  { %s1027_s22 = smov 256   ;;  %s1028_s23 = smov 16  }
  0x13   :  { %43 = dma.hbm_to_vmem [thread:$0]  %s1197_s2, 4096, %s38_s13, [#allocation7], %s1027_s22, %s1027_s22, %s1028_s23  }
  0x14   :  { %s1029_s0 = smov [#allocation9]   ;;  %s1030_s27 = smov [#allocation3]  }
  0x15   :  { %s65_s26 = sshll.u32 %s1029_s0, 4  ;;  %s28_s28 = sshll.u32 %s1030_s27, 4  ;;  %s66_s26 = int_to_ptr.vmem [resolvable:$true] %s65_s26  ;;  %s29_s28 = int_to_ptr.vmem [resolvable:$true] %s28_s28 }
  0x16   :  { %s908_s11 = scalar_lea.hbm %s1201_s6, 8192 }
  0x17   :  { %p909_p8 = scmp.ne.s32.totalorder %s1201_s6, %s908_s11  ;;  %p912_p9 = scmp.lt.u32.totalorder %s908_s11, %s1201_s6 }
  0x19   :  { %p914_p10 = pnand %p912_p9, %p909_p8 }
  0x1b   :  { %917 = shalt.err (!%p914_p10)
}
  0x1c   :  { %s918_s2 = scalar_lea.vmem %s66_s26, 8192  ;;  %p923_p12 = scmp.lt.s32.totalorder %s66_s26, %s66_s26 }
  0x1d   :  { %p919_p11 = scmp.ne.s32.totalorder %s66_s26, %s918_s2  ;;  %p924_p13 = scmp.lt.s32.totalorder %s918_s2, %s918_s2 }
  0x1f   :  { %p925_p0 = por %p924_p13, %p923_p12 }
  0x21   :  { %p926_p1 = pnand %p925_p0, %p919_p11 }
  0x23   :  { %929 = shalt.err (!%p926_p1)
}
  0x24   :  { %71 = dma.hbm_to_vmem [thread:$0]  %s1201_s6, 8192, %s66_s26, [#allocation10], %s1027_s22, %s1027_s22, %s1028_s23  }
  0x25   :  { %s930_s20 = scalar_lea.hbm %s1196_s1, 128 }
  0x26   :  { %p931_p2 = scmp.ne.s32.totalorder %s1196_s1, %s930_s20  ;;  %p934_p3 = scmp.lt.u32.totalorder %s930_s20, %s1196_s1 }
  0x28   :  { %p936_p4 = pnand %p934_p3, %p931_p2 }
  0x2a   :  { %939 = shalt.err (!%p936_p4)
}
  0x2b   :  { %s940_s27 = scalar_lea.vmem %s29_s28, 128  ;;  %p945_p6 = scmp.lt.s32.totalorder %s29_s28, %s29_s28 }
  0x2c   :  { %p941_p5 = scmp.ne.s32.totalorder %s29_s28, %s940_s27  ;;  %p946_p7 = scmp.lt.s32.totalorder %s940_s27, %s940_s27 }
  0x2e   :  { %p947_p8 = por %p946_p7, %p945_p6 }
  0x30   :  { %p948_p9 = pnand %p947_p8, %p941_p5 }
  0x32   :  { %951 = shalt.err (!%p948_p9)
}
  0x33   :  { %31 = dma.hbm_to_vmem [thread:$0]  %s1196_s1, 128, %s29_s28, [#allocation4]  }
  0x34   :  { %s1031_s29 = smov [#allocation8]   ;;  %s1032_s11 = smov [#allocation11]  }
  0x35   :  { %s51_s30 = sshll.u32 %s1031_s29, 4  ;;  %s79_s12 = sshll.u32 %s1032_s11, 4  ;;  %s52_s30 = int_to_ptr.vmem [resolvable:$true] %s51_s30  ;;  %s80_s12 = int_to_ptr.vmem [resolvable:$true] %s79_s12 }
  0x36   :  { %s952_s16 = scalar_lea.hbm %s1199_s4, 8192 }
  0x37   :  { %p953_p10 = scmp.ne.s32.totalorder %s1199_s4, %s952_s16  ;;  %p956_p11 = scmp.lt.u32.totalorder %s952_s16, %s1199_s4 }
  0x39   :  { %p958_p12 = pnand %p956_p11, %p953_p10 }
  0x3b   :  { %961 = shalt.err (!%p958_p12)
}
  0x3c   :  { %s962_s1 = scalar_lea.vmem %s52_s30, 8192  ;;  %p967_p0 = scmp.lt.s32.totalorder %s52_s30, %s52_s30 }
  0x3d   :  { %p963_p13 = scmp.ne.s32.totalorder %s52_s30, %s962_s1  ;;  %p968_p1 = scmp.lt.s32.totalorder %s962_s1, %s962_s1 }
  0x3f   :  { %p969_p2 = por %p968_p1, %p967_p0 }
  0x41   :  { %p970_p3 = pnand %p969_p2, %p963_p13 }
  0x43   :  { %973 = shalt.err (!%p970_p3)
}
  0x44   :  { %57 = dma.hbm_to_vmem [thread:$0]  %s1199_s4, 8192, %s52_s30, [#allocation7], %s1027_s22, %s1027_s22, %s1028_s23  }
  0x45   :  { %s974_s24 = scalar_lea.hbm %s1203_s8, 4096 }
  0x46   :  { %p975_p4 = scmp.ne.s32.totalorder %s1203_s8, %s974_s24  ;;  %p978_p5 = scmp.lt.u32.totalorder %s974_s24, %s1203_s8 }
  0x48   :  { %p980_p6 = pnand %p978_p5, %p975_p4 }
  0x4a   :  { %983 = shalt.err (!%p980_p6)
}
  0x4b   :  { %s984_s26 = scalar_lea.vmem %s80_s12, 4096  ;;  %p989_p8 = scmp.lt.s32.totalorder %s80_s12, %s80_s12 }
  0x4c   :  { %p985_p7 = scmp.ne.s32.totalorder %s80_s12, %s984_s26  ;;  %p990_p9 = scmp.lt.s32.totalorder %s984_s26, %s984_s26 }
  0x4e   :  { %p991_p10 = por %p990_p9, %p989_p8 }
  0x50   :  { %p992_p11 = pnand %p991_p10, %p985_p7 }
  0x52   :  { %995 = shalt.err (!%p992_p11)
}
  0x53   :  { %s1033_s4 = smov 128   ;;  %s1034_s22 = smov 8  }
  0x54   :  { %85 = dma.hbm_to_vmem [thread:$0]  %s1203_s8, 4096, %s80_s12, [#allocation10], %s1033_s4, %s1033_s4, %s1034_s22  }
  0x55   :  { %1018 = dma.done.wait [#allocation4], 128  }
  0x56   :  { %1019 = vsyncadd [#allocation4], 4294967168 }
  0x57   :  { %1020 = dma.done.wait [#allocation7], 12288  }
  0x58   :  { %1021 = vsyncadd [#allocation7], 4294955008 }
  0x59   :  { %1022 = dma.done.wait [#allocation10], 12288  }
  0x5a   :  { %1023 = vsyncadd [#allocation10], 4294955008  ;;  %v1035_v0 = vmov 0.0   ;;  %v105_v1 = vld [vmem:[#allocation6 + $0x8] sm:$0xff]  ;;  %v107_v2 = vld [vmem:[#allocation6 + $0x18] sm:$0xff] }
  0x5b   :  { %212 = vmatprep.mubr.f32.mxu0 %v1035_v0  ;;  %v104_v3 = vld [vmem:[#allocation6] sm:$0xff]  ;;  %v683_v4 = vpack.c.bf16 %v107_v2, %v105_v1  ;;  %v106_v5 = vld [vmem:[#allocation6 + $0x10] sm:$0xff]  ;;  %v109_v6 = vld [vmem:[#allocation6 + $0x28] sm:$0xff] }
  0x5c   :  { %v111_v7 = vld [vmem:[#allocation6 + $0x38] sm:$0xff]  ;;  %v685_v8 = vpack.c.bf16 %v106_v5, %v104_v3  ;;  %v108_v10 = vld [vmem:[#allocation6 + $0x20] sm:$0xff]  ;;  %v110_v11 = vld [vmem:[#allocation6 + $0x30] sm:$0xff] }
  0x5d   :  { %v687_v9 = vpack.c.bf16 %v111_v7, %v109_v6  ;;  %v113_v12 = vld [vmem:[#allocation6 + $0x48] sm:$0xff]  ;;  %684 = vmatprep.subr.bf16.mxu0 %v683_v4  ;;  %v115_v13 = vld [vmem:[#allocation6 + $0x58] sm:$0xff]  ;;  %v689_v14 = vpack.c.bf16 %v110_v11, %v108_v10  ;;  %v112_v16 = vld [vmem:[#allocation6 + $0x40] sm:$0xff] }
  0x5e   :  { %686 = vmatpush1.bf16.msra.mxu0 %v685_v8  ;;  %v691_v15 = vpack.c.bf16 %v115_v13, %v113_v12  ;;  %v114_v17 = vld [vmem:[#allocation6 + $0x50] sm:$0xff]  ;;  %v117_v18 = vld [vmem:[#allocation6 + $0x68] sm:$0xff]  ;;  %v119_v19 = vld [vmem:[#allocation6 + $0x78] sm:$0xff] }
  0x5f   :  { %688 = vmatprep.subr.bf16.mxu0 %v687_v9  ;;  %v693_v20 = vpack.c.bf16 %v114_v17, %v112_v16  ;;  %v695_v21 = vpack.c.bf16 %v119_v19, %v117_v18  ;;  %v116_v22 = vld [vmem:[#allocation6 + $0x60] sm:$0xff]  ;;  %v118_v23 = vld [vmem:[#allocation6 + $0x70] sm:$0xff]  ;;  %v121_v24 = vld [vmem:[#allocation6 + $0x88] sm:$0xff] }
  0x60   :  { %v123_v25 = vld [vmem:[#allocation6 + $0x98] sm:$0xff]  ;;  %v120_v26 = vld [vmem:[#allocation6 + $0x80] sm:$0xff]  ;;  %v122_v27 = vld [vmem:[#allocation6 + $0x90] sm:$0xff]  ;;  %v697_v31 = vpack.c.bf16 %v118_v23, %v116_v22 }
  0x61   :  { %v222_v28 = vld [vmem:[#allocation8 + $0x8] sm:$0xff]  ;;  %v224_v29 = vld [vmem:[#allocation8 + $0x18] sm:$0xff]  ;;  %v221_v30 = vld [vmem:[#allocation8] sm:$0xff]  ;;  %v699_v36 = vpack.c.bf16 %v123_v25, %v121_v24  ;;  %v701_v46 = vpack.c.bf16 %v122_v27, %v120_v26 }
  0x62   :  { %690 = vmatpush1.bf16.msra.mxu0 %v689_v14  ;;  %v715_v32 = vpack.c.bf16 %v224_v29, %v222_v28  ;;  %v223_v33 = vld [vmem:[#allocation8 + $0x10] sm:$0xff]  ;;  %v226_v34 = vld [vmem:[#allocation8 + $0x28] sm:$0xff]  ;;  %v228_v35 = vld [vmem:[#allocation8 + $0x38] sm:$0xff] }
  0x63   :  { %692 = vmatprep.subr.bf16.mxu0 %v691_v15  ;;  %v717_v37 = vpack.c.bf16 %v223_v33, %v221_v30  ;;  %v719_v38 = vpack.c.bf16 %v228_v35, %v226_v34  ;;  %v225_v39 = vld [vmem:[#allocation8 + $0x20] sm:$0xff]  ;;  %v227_v40 = vld [vmem:[#allocation8 + $0x30] sm:$0xff]  ;;  %v230_v41 = vld [vmem:[#allocation8 + $0x48] sm:$0xff] }
  0x64   :  { %v125_v42 = vld [vmem:[#allocation6 + $0xa8] sm:$0xff]  ;;  %v127_v43 = vld [vmem:[#allocation6 + $0xb8] sm:$0xff]  ;;  %716 = vmatprep.subr.bf16.mxu1 %v715_v32  ;;  %v721_v45 = vpack.c.bf16 %v227_v40, %v225_v39  ;;  %v124_v47 = vld [vmem:[#allocation6 + $0xa0] sm:$0xff] }
  0x65   :  { %v232_v44 = vld [vmem:[#allocation8 + $0x58] sm:$0xff]  ;;  %718 = vmatpush1.bf16.msra.mxu1 %v717_v37  ;;  %v229_v49 = vld [vmem:[#allocation8 + $0x40] sm:$0xff]  ;;  %v231_v50 = vld [vmem:[#allocation8 + $0x50] sm:$0xff]  ;;  %v703_v51 = vpack.c.bf16 %v127_v43, %v125_v42 }
  0x66   :  { %694 = vmatpush1.bf16.msra.mxu0 %v693_v20  ;;  %720 = vmatprep.subr.bf16.mxu1 %v719_v38  ;;  %v723_v48 = vpack.c.bf16 %v232_v44, %v230_v41  ;;  %v126_v52 = vld [vmem:[#allocation6 + $0xb0] sm:$0xff]  ;;  %v234_v53 = vld [vmem:[#allocation8 + $0x68] sm:$0xff]  ;;  %v236_v54 = vld [vmem:[#allocation8 + $0x78] sm:$0xff]  ;;  %v725_v57 = vpack.c.bf16 %v231_v50, %v229_v49 }
  0x67   :  { %696 = vmatprep.subr.bf16.mxu0 %v695_v21  ;;  %v129_v55 = vld [vmem:[#allocation6 + $0xc8] sm:$0xff]  ;;  %v131_v56 = vld [vmem:[#allocation6 + $0xd8] sm:$0xff]  ;;  %v705_v58 = vpack.c.bf16 %v126_v52, %v124_v47  ;;  %v128_v59 = vld [vmem:[#allocation6 + $0xc0] sm:$0xff]  ;;  %v727_v60 = vpack.c.bf16 %v236_v54, %v234_v53 }
  0x68   :  { %v233_v61 = vld [vmem:[#allocation8 + $0x60] sm:$0xff]  ;;  %v235_v62 = vld [vmem:[#allocation8 + $0x70] sm:$0xff]  ;;  %v707_v63 = vpack.c.bf16 %v131_v56, %v129_v55  ;;  %v238_v1 = vld [vmem:[#allocation8 + $0x88] sm:$0xff] }
  0x69   :  { %722 = vmatpush1.bf16.msra.mxu1 %v721_v45  ;;  %v130_v0 = vld [vmem:[#allocation6 + $0xd0] sm:$0xff]  ;;  %v240_v2 = vld [vmem:[#allocation8 + $0x98] sm:$0xff]  ;;  %v133_v3 = vld [vmem:[#allocation6 + $0xe8] sm:$0xff]  ;;  %v729_v5 = vpack.c.bf16 %v235_v62, %v233_v61 }
  0x6a   :  { %698 = vmatpush1.bf16.msra.mxu0 %v697_v31  ;;  %724 = vmatprep.subr.bf16.mxu1 %v723_v48  ;;  %v135_v4 = vld [vmem:[#allocation6 + $0xf8] sm:$0xff]  ;;  %v709_v6 = vpack.c.bf16 %v130_v0, %v128_v59  ;;  %v132_v7 = vld [vmem:[#allocation6 + $0xe0] sm:$0xff]  ;;  %v731_v8 = vpack.c.bf16 %v240_v2, %v238_v1  ;;  %v239_v10 = vld [vmem:[#allocation8 + $0x90] sm:$0xff] }
  0x6b   :  { %700 = vmatprep.subr.bf16.mxu0 %v699_v36  ;;  %v237_v9 = vld [vmem:[#allocation8 + $0x80] sm:$0xff]  ;;  %v711_v11 = vpack.c.bf16 %v135_v4, %v133_v3  ;;  %v134_v12 = vld [vmem:[#allocation6 + $0xf0] sm:$0xff]  ;;  %v242_v13 = vld [vmem:[#allocation8 + $0xa8] sm:$0xff] }
  0x6c   :  { %v244_v14 = vld [vmem:[#allocation8 + $0xb8] sm:$0xff]  ;;  %v733_v15 = vpack.c.bf16 %v239_v10, %v237_v9  ;;  %v713_v16 = vpack.c.bf16 %v134_v12, %v132_v7  ;;  %v241_v18 = vld [vmem:[#allocation8 + $0xa0] sm:$0xff]  ;;  %v243_v19 = vld [vmem:[#allocation8 + $0xb0] sm:$0xff] }
  0x6d   :  { %726 = vmatpush1.bf16.msra.mxu1 %v725_v57  ;;  %v735_v17 = vpack.c.bf16 %v244_v14, %v242_v13  ;;  %v246_v20 = vld [vmem:[#allocation8 + $0xc8] sm:$0xff]  ;;  %v248_v21 = vld [vmem:[#allocation8 + $0xd8] sm:$0xff]  ;;  %v737_v22 = vpack.c.bf16 %v243_v19, %v241_v18  ;;  %v245_v25 = vld [vmem:[#allocation8 + $0xc0] sm:$0xff] }
  0x6e   :  { %702 = vmatpush1.bf16.msra.mxu0 %v701_v46  ;;  %728 = vmatprep.subr.bf16.mxu1 %v727_v60  ;;  %v103_v23 = vld [vmem:[#allocation3] sm:$0xff]  ;;  %v739_v24 = vpack.c.bf16 %v248_v21, %v246_v20  ;;  %v247_v26 = vld [vmem:[#allocation8 + $0xd0] sm:$0xff]  ;;  %v250_v27 = vld [vmem:[#allocation8 + $0xe8] sm:$0xff] }
  0x6f   :  { %704 = vmatprep.subr.bf16.mxu0 %v703_v51  ;;  %v252_v28 = vld [vmem:[#allocation8 + $0xf8] sm:$0xff]  ;;  %v741_v29 = vpack.c.bf16 %v247_v26, %v245_v25  ;;  %v249_v31 = vld [vmem:[#allocation8 + $0xe0] sm:$0xff]  ;;  %v251_v32 = vld [vmem:[#allocation8 + $0xf0] sm:$0xff] }
  0x70   :  { %v743_v30 = vpack.c.bf16 %v252_v28, %v250_v27  ;;  %v254_v33 = vld [vmem:[#allocation8 + $0x108] sm:$0xff]  ;;  %v256_v34 = vld [vmem:[#allocation8 + $0x118] sm:$0xff]  ;;  %v745_v35 = vpack.c.bf16 %v251_v32, %v249_v31  ;;  %v253_v37 = vld [vmem:[#allocation8 + $0x100] sm:$0xff] }
  0x71   :  { %730 = vmatpush1.bf16.msra.mxu1 %v729_v5  ;;  %v747_v36 = vpack.c.bf16 %v256_v34, %v254_v33  ;;  %v255_v38 = vld [vmem:[#allocation8 + $0x110] sm:$0xff]  ;;  %v258_v39 = vld [vmem:[#allocation8 + $0x128] sm:$0xff]  ;;  %v260_v40 = vld [vmem:[#allocation8 + $0x138] sm:$0xff] }
  0x72   :  { %706 = vmatpush1.bf16.msra.mxu0 %v705_v58  ;;  %732 = vmatprep.subr.bf16.mxu1 %v731_v8  ;;  %v749_v41 = vpack.c.bf16 %v255_v38, %v253_v37  ;;  %v751_v42 = vpack.c.bf16 %v260_v40, %v258_v39  ;;  %v257_v43 = vld [vmem:[#allocation8 + $0x120] sm:$0xff]  ;;  %v259_v44 = vld [vmem:[#allocation8 + $0x130] sm:$0xff]  ;;  %v262_v45 = vld [vmem:[#allocation8 + $0x148] sm:$0xff] }
  0x73   :  { %708 = vmatprep.subr.bf16.mxu0 %v707_v63  ;;  %v264_v46 = vld [vmem:[#allocation8 + $0x158] sm:$0xff]  ;;  %v753_v47 = vpack.c.bf16 %v259_v44, %v257_v43  ;;  %v261_v49 = vld [vmem:[#allocation8 + $0x140] sm:$0xff]  ;;  %v263_v50 = vld [vmem:[#allocation8 + $0x150] sm:$0xff] }
  0x74   :  { %v755_v48 = vpack.c.bf16 %v264_v46, %v262_v45  ;;  %v266_v51 = vld [vmem:[#allocation8 + $0x168] sm:$0xff]  ;;  %v268_v52 = vld [vmem:[#allocation8 + $0x178] sm:$0xff]  ;;  %v757_v53 = vpack.c.bf16 %v263_v50, %v261_v49  ;;  %v265_v55 = vld [vmem:[#allocation8 + $0x160] sm:$0xff] }
  0x75   :  { %734 = vmatpush1.bf16.msra.mxu1 %v733_v15  ;;  %v759_v54 = vpack.c.bf16 %v268_v52, %v266_v51  ;;  %v267_v56 = vld [vmem:[#allocation8 + $0x170] sm:$0xff]  ;;  %v270_v57 = vld [vmem:[#allocation8 + $0x188] sm:$0xff]  ;;  %v272_v58 = vld [vmem:[#allocation8 + $0x198] sm:$0xff] }
  0x76   :  { %710 = vmatpush1.bf16.msra.mxu0 %v709_v6  ;;  %736 = vmatprep.subr.bf16.mxu1 %v735_v17  ;;  %v761_v59 = vpack.c.bf16 %v267_v56, %v265_v55  ;;  %v763_v60 = vpack.c.bf16 %v272_v58, %v270_v57  ;;  %v269_v61 = vld [vmem:[#allocation8 + $0x180] sm:$0xff]  ;;  %v271_v62 = vld [vmem:[#allocation8 + $0x190] sm:$0xff]  ;;  %v274_v63 = vld [vmem:[#allocation8 + $0x1a8] sm:$0xff] }
  0x77   :  { %712 = vmatprep.subr.bf16.mxu0 %v711_v11  ;;  %v276_v0 = vld [vmem:[#allocation8 + $0x1b8] sm:$0xff]  ;;  %v765_v1 = vpack.c.bf16 %v271_v62, %v269_v61  ;;  %v273_v3 = vld [vmem:[#allocation8 + $0x1a0] sm:$0xff]  ;;  %v275_v4 = vld [vmem:[#allocation8 + $0x1b0] sm:$0xff] }
  0x78   :  { %v767_v2 = vpack.c.bf16 %v276_v0, %v274_v63  ;;  %v278_v5 = vld [vmem:[#allocation8 + $0x1c8] sm:$0xff]  ;;  %v280_v6 = vld [vmem:[#allocation8 + $0x1d8] sm:$0xff]  ;;  %v769_v7 = vpack.c.bf16 %v275_v4, %v273_v3  ;;  %v277_v9 = vld [vmem:[#allocation8 + $0x1c0] sm:$0xff] }
  0x79   :  { %738 = vmatpush1.bf16.msra.mxu1 %v737_v22  ;;  %v771_v8 = vpack.c.bf16 %v280_v6, %v278_v5  ;;  %v279_v10 = vld [vmem:[#allocation8 + $0x1d0] sm:$0xff]  ;;  %v282_v12 = vld [vmem:[#allocation8 + $0x1e8] sm:$0xff]  ;;  %v284_v13 = vld [vmem:[#allocation8 + $0x1f8] sm:$0xff] }
  0x7a   :  { %714 = vmatpush1.bf16.msra.mxu0 %v713_v16  ;;  %740 = vmatprep.subr.bf16.mxu1 %v739_v24  ;;  %v773_v11 = vpack.c.bf16 %v279_v10, %v277_v9  ;;  %v775_v14 = vpack.c.bf16 %v284_v13, %v282_v12  ;;  %v281_v15 = vld [vmem:[#allocation8 + $0x1e0] sm:$0xff]  ;;  %v283_v16 = vld [vmem:[#allocation8 + $0x1f0] sm:$0xff]  ;;  %v371_v18 = vld [vmem:[#allocation9 + $0x8] sm:$0xff] }
  0x7b   :  { %v777_v17 = vpack.c.bf16 %v283_v16, %v281_v15  ;;  %v373_v19 = vld [vmem:[#allocation9 + $0x18] sm:$0xff]  ;;  %v370_v20 = vld [vmem:[#allocation9] sm:$0xff]  ;;  %v372_v22 = vld [vmem:[#allocation9 + $0x10] sm:$0xff] }
  0x7c   :  { %v779_v21 = vpack.c.bf16 %v373_v19, %v371_v18  ;;  %v377_v24 = vld [vmem:[#allocation9 + $0x38] sm:$0xff]  ;;  %v781_v25 = vpack.c.bf16 %v372_v22, %v370_v20  ;;  %v374_v27 = vld [vmem:[#allocation9 + $0x20] sm:$0xff]  ;;  %v376_v28 = vld [vmem:[#allocation9 + $0x30] sm:$0xff] }
  0x7d   :  { %213 = vmatmul.mubr.f32.vlgmr.msra.gmra.mrb[0].mxu0 %v103_v23  ;;  %742 = vmatpush1.bf16.msra.mxu1 %v741_v29  ;;  %v375_v23 = vld [vmem:[#allocation9 + $0x28] sm:$0xff]  ;;  %v785_v31 = vpack.c.bf16 %v376_v28, %v374_v27  ;;  %v378_v33 = vld [vmem:[#allocation9 + $0x40] sm:$0xff]  ;;  %v380_v34 = vld [vmem:[#allocation9 + $0x50] sm:$0xff] }
  0x7e   :  { %744 = vmatprep.subr.bf16.mxu1 %v743_v30  ;;  %v783_v26 = vpack.c.bf16 %v377_v24, %v375_v23  ;;  %v379_v29 = vld [vmem:[#allocation9 + $0x48] sm:$0xff]  ;;  %780 = vmatprep.subr.bf16.mxu0 %v779_v21  ;;  %v381_v30 = vld [vmem:[#allocation9 + $0x58] sm:$0xff]  ;;  %v789_v37 = vpack.c.bf16 %v380_v34, %v378_v33  ;;  %v382_v39 = vld [vmem:[#allocation9 + $0x60] sm:$0xff] }
  0x7f   :  { %782 = vmatpush1.bf16.msra.mxu0 %v781_v25  ;;  %v787_v32 = vpack.c.bf16 %v381_v30, %v379_v29  ;;  %v384_v40 = vld [vmem:[#allocation9 + $0x70] sm:$0xff]  ;;  %v386_v45 = vld [vmem:[#allocation9 + $0x80] sm:$0xff]  ;;  %v411_v13 = vld [vmem:[#allocation9 + $0x148] sm:$0xff] }
  0x80   :  { %784 = vmatprep.subr.bf16.mxu0 %v783_v26  ;;  %v793_v43 = vpack.c.bf16 %v384_v40, %v382_v39  ;;  %v388_v46 = vld [vmem:[#allocation9 + $0x90] sm:$0xff]  ;;  %v390_v51 = vld [vmem:[#allocation9 + $0xa0] sm:$0xff]  ;;  %v415_v19 = vld [vmem:[#allocation9 + $0x168] sm:$0xff] }
  0x81   :  { %746 = vmatpush1.bf16.msra.mxu1 %v745_v35  ;;  %v383_v35 = vld [vmem:[#allocation9 + $0x68] sm:$0xff]  ;;  %v797_v49 = vpack.c.bf16 %v388_v46, %v386_v45  ;;  %v392_v52 = vld [vmem:[#allocation9 + $0xb0] sm:$0xff]  ;;  %v394_v57 = vld [vmem:[#allocation9 + $0xc0] sm:$0xff] }
  0x82   :  { %748 = vmatprep.subr.bf16.mxu1 %v747_v36  ;;  %v385_v36 = vld [vmem:[#allocation9 + $0x78] sm:$0xff]  ;;  %v801_v55 = vpack.c.bf16 %v392_v52, %v390_v51  ;;  %v396_v58 = vld [vmem:[#allocation9 + $0xd0] sm:$0xff]  ;;  %v398_v63 = vld [vmem:[#allocation9 + $0xe0] sm:$0xff] }
  0x83   :  { %786 = vmatpush1.bf16.msra.mxu0 %v785_v31  ;;  %v791_v38 = vpack.c.bf16 %v385_v36, %v383_v35  ;;  %v805_v61 = vpack.c.bf16 %v396_v58, %v394_v57  ;;  %v400_v0 = vld [vmem:[#allocation9 + $0xf0] sm:$0xff]  ;;  %v402_v5 = vld [vmem:[#allocation9 + $0x100] sm:$0xff]  ;;  %v417_v20 = vld [vmem:[#allocation9 + $0x178] sm:$0xff] }
  0x84   :  { %788 = vmatprep.subr.bf16.mxu0 %v787_v32  ;;  %v809_v3 = vpack.c.bf16 %v400_v0, %v398_v63  ;;  %v404_v6 = vld [vmem:[#allocation9 + $0x110] sm:$0xff]  ;;  %v823_v22 = vpack.c.bf16 %v417_v20, %v415_v19  ;;  %v414_v23 = vld [vmem:[#allocation9 + $0x160] sm:$0xff]  ;;  %v419_v25 = vld [vmem:[#allocation9 + $0x188] sm:$0xff] }
  0x85   :  { %750 = vmatpush1.bf16.msra.mxu1 %v749_v41  ;;  %v387_v41 = vld [vmem:[#allocation9 + $0x88] sm:$0xff]  ;;  %v813_v9 = vpack.c.bf16 %v404_v6, %v402_v5  ;;  %v408_v12 = vld [vmem:[#allocation9 + $0x130] sm:$0xff]  ;;  %v421_v26 = vld [vmem:[#allocation9 + $0x198] sm:$0xff] }
  0x86   :  { %752 = vmatprep.subr.bf16.mxu1 %v751_v42  ;;  %v389_v42 = vld [vmem:[#allocation9 + $0x98] sm:$0xff]  ;;  %v412_v18 = vld [vmem:[#allocation9 + $0x150] sm:$0xff]  ;;  %v827_v28 = vpack.c.bf16 %v421_v26, %v419_v25  ;;  %v418_v29 = vld [vmem:[#allocation9 + $0x180] sm:$0xff] }
  0x87   :  { %790 = vmatpush1.bf16.msra.mxu0 %v789_v37  ;;  %v795_v44 = vpack.c.bf16 %v389_v42, %v387_v41  ;;  %v416_v24 = vld [vmem:[#allocation9 + $0x170] sm:$0xff]  ;;  %v423_v31 = vld [vmem:[#allocation9 + $0x1a8] sm:$0xff]  ;;  %v425_v32 = vld [vmem:[#allocation9 + $0x1b8] sm:$0xff]  ;;  %v138_v41 = vlaneseq }
  0x88   :  { %792 = vmatprep.subr.bf16.mxu0 %v791_v38  ;;  %v825_v27 = vpack.c.bf16 %v416_v24, %v414_v23  ;;  %v420_v30 = vld [vmem:[#allocation9 + $0x190] sm:$0xff]  ;;  %v831_v34 = vpack.c.bf16 %v425_v32, %v423_v31  ;;  %v422_v35 = vld [vmem:[#allocation9 + $0x1a0] sm:$0xff]  ;;  %v427_v37 = vld [vmem:[#allocation9 + $0x1c8] sm:$0xff] }
  0x89   :  { %754 = vmatpush1.bf16.msra.mxu1 %v753_v47  ;;  %v391_v47 = vld [vmem:[#allocation9 + $0xa8] sm:$0xff]  ;;  %v829_v33 = vpack.c.bf16 %v420_v30, %v418_v29  ;;  %v424_v36 = vld [vmem:[#allocation9 + $0x1b0] sm:$0xff]  ;;  %v429_v38 = vld [vmem:[#allocation9 + $0x1d8] sm:$0xff]  ;;  %v139_v42 = vshrl.u32 %v138_v41, 7 }
  0x8a   :  { %756 = vmatprep.subr.bf16.mxu1 %v755_v48  ;;  %v393_v48 = vld [vmem:[#allocation9 + $0xb8] sm:$0xff]  ;;  %v833_v39 = vpack.c.bf16 %v424_v36, %v422_v35  ;;  %v835_v40 = vpack.c.bf16 %v429_v38, %v427_v37  ;;  %v431_v57 = vld [vmem:[#allocation9 + $0x1e8] sm:$0xff]  ;;  %v535_v63 = vld [vmem:[#allocation11 + $0x80] sm:$0xff] }
  0x8b   :  { %794 = vmatpush1.bf16.msra.mxu0 %v793_v43  ;;  %v799_v50 = vpack.c.bf16 %v393_v48, %v391_v47  ;;  %v1161_v43 = vsub.s32 0, %v139_v42  ;;  %v1166_v45 = vsub.s32 1, %v139_v42  ;;  %v433_v58 = vld [vmem:[#allocation9 + $0x1f8] sm:$0xff]  ;;  %v536_v0 = vld [vmem:[#allocation11 + $0x88] sm:$0xff]  ;;  %v525_v20 = vld [vmem:[#allocation11 + $0x30] sm:$0xff] }
  0x8c   :  { %796 = vmatprep.subr.bf16.mxu0 %v795_v44  ;;  %v136_v44 = vld [vmem:[%s1198_s3] sm:$0x3]  ;;  %v544_v23 = vld [vmem:[#allocation11 + $0xc8] sm:$0xff]  ;;  %v527_v26 = vld [vmem:[#allocation11 + $0x40] sm:$0xff] }
  0x8d   :  { %758 = vmatpush1.bf16.msra.mxu1 %v757_v53  ;;  %v395_v53 = vld [vmem:[#allocation9 + $0xc8] sm:$0xff]  ;;  %v141_v46 = vrot.slane %v136_v44, %v1161_v43  ;;  %v145_v47 = vrot.slane %v136_v44, %v1166_v45  ;;  %v538_v5 = vld [vmem:[#allocation11 + $0x98] sm:$0xff]  ;;  %v529_v32 = vld [vmem:[#allocation11 + $0x50] sm:$0xff] }
  0x8e   :  { %760 = vmatprep.subr.bf16.mxu1 %v759_v54  ;;  %v397_v54 = vld [vmem:[#allocation9 + $0xd8] sm:$0xff]  ;;  %v548_v35 = vld [vmem:[#allocation11 + $0xe8] sm:$0xff] }
  0x8f   :  { %798 = vmatpush1.bf16.msra.mxu0 %v797_v49  ;;  %v803_v56 = vpack.c.bf16 %v397_v54, %v395_v53  ;;  %v426_v54 = vld [vmem:[#allocation9 + $0x1c0] sm:$0xff]  ;;  %v546_v29 = vld [vmem:[#allocation11 + $0xd8] sm:$0xff] }
  0x90   :  { %800 = vmatprep.subr.bf16.mxu0 %v799_v50  ;;  %v285_v38 = vld [vmem:[%s1200_s5] sm:$0x3] }
  0x91   :  { %762 = vmatpush1.bf16.msra.mxu1 %v761_v59  ;;  %v399_v59 = vld [vmem:[#allocation9 + $0xe8] sm:$0xff] }
  0x92   :  { %764 = vmatprep.subr.bf16.mxu1 %v763_v60  ;;  %v401_v60 = vld [vmem:[#allocation9 + $0xf8] sm:$0xff] }
  0x93   :  { %802 = vmatpush1.bf16.msra.mxu0 %v801_v55  ;;  %v807_v62 = vpack.c.bf16 %v401_v60, %v399_v59  ;;  %v428_v55 = vld [vmem:[#allocation9 + $0x1d0] sm:$0xff]  ;;  %v839_v59 = vpack.c.bf16 %v433_v58, %v431_v57  ;;  %v430_v60 = vld [vmem:[#allocation9 + $0x1e0] sm:$0xff]  ;;  %v434_v58 = vld [vmem:[%s1202_s7] sm:$0x3]  ;;  %s1036_s7 = smov [#allocation12]  }
  0x94   :  { %804 = vmatprep.subr.bf16.mxu0 %v803_v56  ;;  %v837_v56 = vpack.c.bf16 %v428_v55, %v426_v54  ;;  %v533_v55 = vld [vmem:[#allocation11 + $0x70] sm:$0xff]  ;;  %s636_s16 = sshll.u32 %s1036_s7, 4  ;;  %s637_s16 = int_to_ptr.vmem [resolvable:$true] %s636_s16 }
  0x95   :  { %766 = vmatpush1.bf16.msra.mxu1 %v765_v1  ;;  %v403_v1 = vld [vmem:[#allocation9 + $0x108] sm:$0xff]  ;;  %s996_s2 = scalar_lea.vmem %s637_s16, 128  ;;  %p1001_p13 = scmp.lt.s32.totalorder %s637_s16, %s637_s16 }
  0x96   :  { %768 = vmatprep.subr.bf16.mxu1 %v767_v2  ;;  %v405_v2 = vld [vmem:[#allocation9 + $0x118] sm:$0xff]  ;;  %p997_p12 = scmp.ne.s32.totalorder %s637_s16, %s996_s2  ;;  %p1002_p0 = scmp.lt.s32.totalorder %s996_s2, %s996_s2 }
  0x97   :  { %806 = vmatpush1.bf16.msra.mxu0 %v805_v61  ;;  %v811_v4 = vpack.c.bf16 %v405_v2, %v403_v1  ;;  %v432_v61 = vld [vmem:[#allocation9 + $0x1f0] sm:$0xff]  ;;  %v519_v1 = vld [vmem:[#allocation11] sm:$0xff]  ;;  %v843_v2 = vpack.c.bf16 %v536_v0, %v535_v63 }
  0x98   :  { %808 = vmatprep.subr.bf16.mxu0 %v807_v62  ;;  %v841_v62 = vpack.c.bf16 %v432_v61, %v430_v60  ;;  %v443_v60 = vrot.slane %v434_v58, %v1166_v45  ;;  %p1003_p1 = por %p1002_p0, %p1001_p13 }
  0x99   :  { %770 = vmatpush1.bf16.msra.mxu1 %v769_v7  ;;  %v407_v7 = vld [vmem:[#allocation9 + $0x128] sm:$0xff] }
  0x9a   :  { %772 = vmatprep.subr.bf16.mxu1 %v771_v8  ;;  %v409_v8 = vld [vmem:[#allocation9 + $0x138] sm:$0xff]  ;;  %p1004_p2 = pnand %p1003_p1, %p997_p12 }
  0x9b   :  { %810 = vmatpush1.bf16.msra.mxu0 %v809_v3  ;;  %v815_v10 = vpack.c.bf16 %v409_v8, %v407_v7  ;;  %v520_v3 = vld [vmem:[#allocation11 + $0x8] sm:$0xff]  ;;  %v521_v8 = vld [vmem:[#allocation11 + $0x10] sm:$0xff] }
  0x9c   :  { %812 = vmatprep.subr.bf16.mxu0 %v811_v4  ;;  %v537_v4 = vld [vmem:[#allocation11 + $0x90] sm:$0xff]  ;;  %v845_v6 = vpack.c.bf16 %v520_v3, %v519_v1 }
  0x9d   :  { %774 = vmatpush1.bf16.msra.mxu1 %v773_v11  ;;  %v406_v11 = vld [vmem:[#allocation9 + $0x120] sm:$0xff]  ;;  %v847_v7 = vpack.c.bf16 %v538_v5, %v537_v4  ;;  %v647_v4 = vld [vmem:[%s1204_s9] ss:$0 sm:$0xff] }
  0x9e   :  { %776 = vmatprep.subr.bf16.mxu1 %v775_v14  ;;  %v413_v14 = vld [vmem:[#allocation9 + $0x158] sm:$0xff]  ;;  %v817_v15 = vpack.c.bf16 %v408_v12, %v406_v11  ;;  %v540_v11 = vld [vmem:[#allocation11 + $0xa8] sm:$0xff] }
  0x9f   :  { %814 = vmatpush1.bf16.msra.mxu0 %v813_v9  ;;  %v819_v16 = vpack.c.bf16 %v413_v14, %v411_v13  ;;  %v522_v9 = vld [vmem:[#allocation11 + $0x18] sm:$0xff]  ;;  %v523_v14 = vld [vmem:[#allocation11 + $0x20] sm:$0xff] }
  0xa0   :  { %816 = vmatprep.subr.bf16.mxu0 %v815_v10  ;;  %v539_v10 = vld [vmem:[#allocation11 + $0xa0] sm:$0xff]  ;;  %v849_v12 = vpack.c.bf16 %v522_v9, %v521_v8 }
  0xa1   :  { %778 = vmatpush1.bf16.msra.mxu1 %v777_v17  ;;  %v410_v17 = vld [vmem:[#allocation9 + $0x140] sm:$0xff]  ;;  %v851_v13 = vpack.c.bf16 %v540_v11, %v539_v10 }
  0xa2   :  { %v821_v21 = vpack.c.bf16 %v412_v18, %v410_v17  ;;  %844 = vmatprep.subr.bf16.mxu1 %v843_v2  ;;  %v542_v17 = vld [vmem:[#allocation11 + $0xb8] sm:$0xff] }
  0xa3   :  { %818 = vmatpush1.bf16.msra.mxu0 %v817_v15  ;;  %v524_v15 = vld [vmem:[#allocation11 + $0x28] sm:$0xff] }
  0xa4   :  { %820 = vmatprep.subr.bf16.mxu0 %v819_v16  ;;  %v541_v16 = vld [vmem:[#allocation11 + $0xb0] sm:$0xff]  ;;  %v853_v18 = vpack.c.bf16 %v524_v15, %v523_v14 }
  0xa5   :  { %v855_v19 = vpack.c.bf16 %v542_v17, %v541_v16 }
  0xa7   :  { %822 = vmatpush1.bf16.msra.mxu0 %v821_v21  ;;  %v526_v21 = vld [vmem:[#allocation11 + $0x38] sm:$0xff] }
  0xa8   :  { %824 = vmatprep.subr.bf16.mxu0 %v823_v22  ;;  %v543_v22 = vld [vmem:[#allocation11 + $0xc0] sm:$0xff]  ;;  %v857_v24 = vpack.c.bf16 %v526_v21, %v525_v20 }
  0xa9   :  { %v859_v25 = vpack.c.bf16 %v544_v23, %v543_v22 }
  0xab   :  { %826 = vmatpush1.bf16.msra.mxu0 %v825_v27  ;;  %v528_v27 = vld [vmem:[#allocation11 + $0x48] sm:$0xff] }
  0xac   :  { %828 = vmatprep.subr.bf16.mxu0 %v827_v28  ;;  %v545_v28 = vld [vmem:[#allocation11 + $0xd0] sm:$0xff]  ;;  %v861_v30 = vpack.c.bf16 %v528_v27, %v527_v26 }
  0xad   :  { %v863_v31 = vpack.c.bf16 %v546_v29, %v545_v28 }
  0xaf   :  { %830 = vmatpush1.bf16.msra.mxu0 %v829_v33  ;;  %v530_v33 = vld [vmem:[#allocation11 + $0x58] sm:$0xff] }
  0xb0   :  { %832 = vmatprep.subr.bf16.mxu0 %v831_v34  ;;  %v547_v34 = vld [vmem:[#allocation11 + $0xe0] sm:$0xff]  ;;  %v865_v36 = vpack.c.bf16 %v530_v33, %v529_v32 }
  0xb1   :  { %v867_v37 = vpack.c.bf16 %v548_v35, %v547_v34 }
  0xb3   :  { %834 = vmatpush1.bf16.msra.mxu0 %v833_v39  ;;  %v290_v39 = vrot.slane %v285_v38, %v1161_v43 }
  0xb4   :  { %836 = vmatprep.subr.bf16.mxu0 %v835_v40  ;;  %v294_v40 = vrot.slane %v285_v38, %v1166_v45 }
  0xb7   :  { %838 = vmatpush1.bf16.msra.mxu0 %v837_v56  ;;  %v534_v56 = vld [vmem:[#allocation11 + $0x78] sm:$0xff] }
  0xb8   :  { %840 = vmatprep.subr.bf16.mxu0 %v839_v59  ;;  %v873_v57 = vpack.c.bf16 %v534_v56, %v533_v55  ;;  %v439_v59 = vrot.slane %v434_v58, %v1161_v43 }
  0xbb   :  { %842 = vmatpush1.bf16.msra.mxu0 %v841_v62 }
 0x150   :  { %v214_v48 = vpop.f32.mrb[0].mxu0 }
 0x151   :  { %v215_v49 = vadd.f32 %v214_v48, %v141_v46  ;;  %v216_v50 = vpop.f32.mrb[1].mxu0 }
 0x152   :  { %v217_v51 = vadd.f32 %v216_v50, %v145_v47  ;;  %v532_v50 = vld [vmem:[#allocation11 + $0x68] sm:$0xff] }
 0x153   :  { %v219_v53 = vmax.f32 %v215_v49, 0.0  ;;  %v531_v49 = vld [vmem:[#allocation11 + $0x60] sm:$0xff] }
 0x154   :  { %v220_v52 = vmax.f32 %v217_v51, 0.0  ;;  %v869_v51 = vpack.c.bf16 %v532_v50, %v531_v49 }
 0x156   :  { %361 = vmatprep.mubr.f32.mxu1 %v220_v52  ;;  %v549_v52 = vld [vmem:[#allocation11 + $0xf0] sm:$0xff] }
 0x157   :  { %362 = vmatmul.mubr.f32.vlgmr.msra.gmra.mrb[0].mxu1 %v219_v53  ;;  %v550_v53 = vld [vmem:[#allocation11 + $0xf8] sm:$0xff] }
 0x158   :  { %846 = vmatpush3.bf16.msra.mxu1 %v845_v6  ;;  %v871_v54 = vpack.c.bf16 %v550_v53, %v549_v52 }
 0x159   :  { %848 = vmatprep.subr.bf16.mxu1 %v847_v7 }
 0x15c   :  { %850 = vmatpush3.bf16.msra.mxu1 %v849_v12 }
 0x15d   :  { %852 = vmatprep.subr.bf16.mxu1 %v851_v13 }
 0x160   :  { %854 = vmatpush3.bf16.msra.mxu1 %v853_v18 }
 0x161   :  { %856 = vmatprep.subr.bf16.mxu1 %v855_v19 }
 0x164   :  { %858 = vmatpush3.bf16.msra.mxu1 %v857_v24 }
 0x165   :  { %860 = vmatprep.subr.bf16.mxu1 %v859_v25 }
 0x168   :  { %862 = vmatpush3.bf16.msra.mxu1 %v861_v30 }
 0x169   :  { %864 = vmatprep.subr.bf16.mxu1 %v863_v31 }
 0x16c   :  { %866 = vmatpush3.bf16.msra.mxu1 %v865_v36 }
 0x16d   :  { %868 = vmatprep.subr.bf16.mxu1 %v867_v37 }
 0x170   :  { %870 = vmatpush3.bf16.msra.mxu1 %v869_v51 }
 0x171   :  { %872 = vmatprep.subr.bf16.mxu1 %v871_v54 }
 0x174   :  { %874 = vmatpush3.bf16.msra.mxu1 %v873_v57 }
 0x22a   :  { %v363_v41 = vpop.f32.mrb[0].mxu1 }
 0x22b   :  { %v364_v42 = vadd.f32 %v363_v41, %v290_v39  ;;  %v365_v44 = vpop.f32.mrb[1].mxu1 }
 0x22c   :  { %v366_v46 = vadd.f32 %v365_v44, %v294_v40 }
 0x22d   :  { %v368_v48 = vmax.f32 %v364_v42, 0.0 }
 0x22e   :  { %v369_v47 = vmax.f32 %v366_v46, 0.0 }
 0x230   :  { %510 = vmatprep.mubr.f32.mxu0 %v369_v47 }
 0x231   :  { %511 = vmatmul.mubr.f32.vlgmr.msra.gmra.mrb[2].mxu0 %v368_v48 }
 0x304   :  { %v512_v61 = vpop.f32.mrb[2].mxu0 }
 0x305   :  { %v513_v62 = vadd.f32 %v512_v61, %v439_v59  ;;  %v514_v63 = vpop.f32.mrb[3].mxu0 }
 0x306   :  { %v515_v0 = vadd.f32 %v514_v63, %v443_v60 }
 0x307   :  { %v517_v2 = vmax.f32 %v513_v62, 0.0 }
 0x308   :  { %v518_v1 = vmax.f32 %v515_v0, 0.0 }
 0x30a   :  { %622 = vmatprep.mubr.f32.mxu1 %v518_v1 }
 0x30b   :  { %623 = vmatmul.mubr.f32.vlgmr.msra.gmra.mrb[2].mxu1 %v517_v2 }
 0x3de   :  { %v680_v3 = vpop.f32.mrb[2].mxu1 }
 0x3df   :  { %v681_v5 = vpop.f32.mrb[3].mxu1 }
 0x3e0   :  { %v682_v6 = vadd.f32 %v681_v5, %v680_v3 }
 0x3e2   :  { %v625_v43 = vadd.f32 %v682_v6, %v647_v4 }
 0x3e4   :  { %v628_v7 = vmax.f32 %v625_v43, 0.0 }
 0x3e6   :  { %629 = vst [vmem:[#allocation12] sm:$0xff] %v628_v7 }
 0x3e7   :  { %1007 = shalt.err (!%p1004_p2)
}
 0x3e8   :  { %s1008_s18 = scalar_lea.hbm %s1205_s10, 128 }
 0x3e9   :  { %p1009_p3 = scmp.ne.s32.totalorder %s1205_s10, %s1008_s18  ;;  %p1012_p4 = scmp.lt.u32.totalorder %s1008_s18, %s1205_s10 }
 0x3eb   :  { %p1014_p5 = pnand %p1012_p4, %p1009_p3 }
 0x3ed   :  { %1017 = shalt.err (!%p1014_p5)
}
 0x3ee   :  { %639 = dma.vmem_to_hbm [thread:$0]  %s637_s16, 128, %s1205_s10, [#allocation5]  }
 0x3ef   :  { %1024 = dma.done.wait [#allocation5], 128  }
 0x3f0   :  { %1025 = vsyncadd [#allocation5], 4294967168 }
 0x3f1   :  { %643 = vsyncpa [#allocation4], 1 }
 0x3f2   :  { %644 = vsyncpa [#allocation7], 1 }
 0x3f3   :  { %645 = vsyncpa [#allocation10], 1 }
 0x3f4   :  { %646 = vsyncpa [#allocation5], 1 }

</bundles_post_ra>
